<compile_context>
chip_gen: v7x
topology: tpu7x:2x2x1
jax: 0.10.0
libtpu: 0.0.40
codegen_flags: <defaults>
</compile_context>

<pallas_src>
import functools
import math

import jax
import jax.numpy as jnp
from jax import lax
from jax.experimental import pallas as pl
from jax.experimental.pallas import tpu as pltpu

_NEG_INF = -1e30   # finite "minus infinity": keeps fully-masked rows NaN-free


# ----------------------- hardware-aware VMEM budget --------------------------

@functools.lru_cache(maxsize=None)
def _vmem_limit_bytes():
    cap = 64 * 1024 * 1024                       # conservative fallback (v7x)
    try:
        cap = int(getattr(pltpu.get_tpu_info(), "vmem_capacity_bytes", cap))
    except Exception:
        pass
    # Leave headroom for compiler-internal scratch; v5e/v6e -> ~100 MiB, v7x -> 48 MiB.
    return int(max(32 * 1024 * 1024,
                   min(cap - 16 * 1024 * 1024, 100 * 1024 * 1024)))


def _round_up(x, m):
    return ((x + m - 1) // m) * m


# ------------------------- tiled linear: x @ W + b ---------------------------

def _linear_kernel(x_ref, w_ref, b_ref, o_ref, acc_ref):
    k = pl.program_id(2)

    @pl.when(k == 0)
    def _init():
        acc_ref[...] = jnp.zeros_like(acc_ref)

    # bf16 MXU matmul with f32 accumulation (2-4x MXU rate vs f32 on v5e/v6e/v7x).
    acc_ref[...] += jnp.dot(
        x_ref[...].astype(jnp.bfloat16),
        w_ref[...].astype(jnp.bfloat16),
        preferred_element_type=jnp.float32)

    @pl.when(k == pl.num_programs(2) - 1)
    def _finalize():
        o_ref[...] = (acc_ref[...] + b_ref[...]).astype(o_ref.dtype)


def pallas_linear(x2d, w, b, *, out_dtype=jnp.float32,
                  tm_pref=512, tn_pref=512, tk_pref=1024):
    """y = x2d @ w + b, tiled over (M, N, K) with a resident f32 accumulator."""
    M, Din = x2d.shape
    Dout = w.shape[1]

    def tile_and_pad(dim, pref):
        if dim <= pref:
            return dim, dim                    # whole-dim block (small, fits VMEM)
        return pref, _round_up(dim, pref)      # fixed tile; pad to a multiple

    tm, Mp = tile_and_pad(M, tm_pref)
    tn, Np = tile_and_pad(Dout, tn_pref)
    tk, Kp = tile_and_pad(Din, tk_pref)

    xp = x2d if (Mp == M and Kp == Din) else jnp.pad(x2d, ((0, Mp - M), (0, Kp - Din)))
    wp = w if (Kp == Din and Np == Dout) else jnp.pad(w, ((0, Kp - Din), (0, Np - Dout)))
    bp = (b if Np == Dout else jnp.pad(b, (0, Np - Dout))).reshape(1, Np)

    out = pl.pallas_call(
        _linear_kernel,
        out_shape=jax.ShapeDtypeStruct((Mp, Np), out_dtype),
        grid=(Mp // tm, Np // tn, Kp // tk),
        in_specs=[
            pl.BlockSpec((tm, tk), lambda i, j, k: (i, k)),
            pl.BlockSpec((tk, tn), lambda i, j, k: (k, j)),
            pl.BlockSpec((1, tn), lambda i, j, k: (0, j)),
        ],
        out_specs=pl.BlockSpec((tm, tn), lambda i, j, k: (i, j)),
        scratch_shapes=[pltpu.VMEM((tm, tn), jnp.float32)],
        compiler_params=pltpu.CompilerParams(
            dimension_semantics=("parallel", "parallel", "arbitrary"),
            vmem_limit_bytes=_vmem_limit_bytes(),
        ),
    )(xp, wp, bp)
    if (Mp, Np) != (M, Dout):
        out = out[:M, :Dout]
    return out


# --------------------- flash-style multi-head attention ----------------------

def _mha_flash_kernel(*refs, num_heads, has_mask, mask_per_head, is_causal, tq, tk):
    if has_mask:
        mask_ref, q_ref, k_ref, v_ref, o_ref, m_sc, l_sc, acc_sc = refs
    else:
        q_ref, k_ref, v_ref, o_ref, m_sc, l_sc, acc_sc = refs

    qi = pl.program_id(1)
    ki = pl.program_id(2)
    D = q_ref.shape[-1]
    d_k = D // num_heads

    @pl.when(ki == 0)
    def _init():
        m_sc[...] = jnp.full_like(m_sc, _NEG_INF)
        l_sc[...] = jnp.zeros_like(l_sc)
        acc_sc[...] = jnp.zeros_like(acc_sc)

    def _compute():
        q = q_ref[0]                   # (tq, D) bf16, 1/sqrt(d_k) folded into W_q
        k = k_ref[0]                   # (tk, D) bf16
        v = v_ref[0]                   # (tk, D) bf16

        if is_causal:
            q_pos = qi * tq + lax.broadcasted_iota(jnp.int32, (tq, tk), 0)
            k_pos = ki * tk + lax.broadcasted_iota(jnp.int32, (tq, tk), 1)
            causal_bias = jnp.where(q_pos >= k_pos, 0.0, _NEG_INF)

        for h in range(num_heads):
            lo, hi = h * d_k, (h + 1) * d_k
            qh, kh, vh = q[:, lo:hi], k[:, lo:hi], v[:, lo:hi]
            # Contract last dims (no K^T materialized), bf16 MXU, f32 accumulate.
            s = lax.dot_general(qh, kh, (((1,), (1,)), ((), ())),
                                preferred_element_type=jnp.float32)   # (tq, tk)
            if has_mask:
                s = s + (mask_ref[0, h] if mask_per_head else mask_ref[0, 0])
            if is_causal:
                s = s + causal_bias
            m_prev = m_sc[h]
            m_new = jnp.maximum(m_prev, jnp.max(s, axis=-1, keepdims=True))
            alpha = jnp.exp(m_prev - m_new)
            p = jnp.exp(s - m_new)
            l_sc[h] = alpha * l_sc[h] + jnp.sum(p, axis=-1, keepdims=True)
            acc_sc[h] = alpha * acc_sc[h] + jnp.dot(
                p.astype(v.dtype), vh, preferred_element_type=jnp.float32)
            m_sc[h] = m_new

    if is_causal:
        # Block-level causal skipping: fully above-diagonal kv tiles do no work.
        pl.when(ki * tk <= qi * tq + tq - 1)(_compute)
    else:
        _compute()

    @pl.when(ki == pl.num_programs(2) - 1)
    def _finalize():
        # One lane-dense, D-wide store per q-tile (heads concatenated side by side).
        parts = []
        for h in range(num_heads):
            inv = pl.reciprocal(l_sc[h], approx=True)          # EUP slot, ~free
            parts.append(acc_sc[h] * inv)
        o_ref[0] = jnp.concatenate(parts, axis=-1).astype(o_ref.dtype)


def _attn_seq_tile(S, max_tile, align):
    if S <= max_tile:
        return S
    t = (max_tile // align) * align
    while t >= align:
        if S % t == 0:
            return t
        t -= align
    # TODO(synk): S has no aligned divisor <= max_tile; padding + in-kernel
    # key-validity masking would be needed. Fall back to the whole sequence.
    return S


def _attn_tile_cap(D, H, d_k, mask_heads, budget):
    dk_pad = d_k if d_k % 128 == 0 else _round_up(d_k, 128)

    def est(t):
        io = 4 * 2 * t * D * 2                     # q/k/v/out blocks, 2x-buffered, bf16
        scr = H * t * 4 * (2 * 128 + dk_pad)       # m/l (lane-padded) + acc scratch
        msk = 2 * mask_heads * t * t * 4           # mask block, 2x-buffered, f32
        return io + scr + msk

    for t in (512, 256, 128, 64):
        if est(t) <= 0.6 * budget:
            return t
    return 64


def pallas_mha(q_arr, k_arr, v_arr, *, num_heads, model_dim, mask=None,
               is_causal=False, col_blocks=(0, 0, 0)):
    """Fused head-split + flash attention (online softmax) + head-combine.

    q_arr/k_arr/v_arr: (B, S, D) projections, or the same (B, S, 3D) fused QKV
    array passed three times with col_blocks=(0, 1, 2) selecting the D-wide
    column block for Q / K / V (no XLA slice copies).
    mask: optional additive f32 mask of shape (1|B, 1|H, S, S), NOT broadcast.
    """
    B, S, _ = q_arr.shape
    D = model_dim
    d_k = D // num_heads

    budget = _vmem_limit_bytes()
    mask_heads = 0 if mask is None else mask.shape[1]
    align = 128 if mask is not None else 8
    cap = _attn_tile_cap(D, num_heads, d_k, mask_heads, budget)
    tq = tk = _attn_seq_tile(S, cap, align)

    cq, ck, cv = col_blocks
    in_specs = []
    inputs = []
    if mask is not None:
        B_m, H_m = mask.shape[0], mask.shape[1]
        if B_m == B:
            mask_map = lambda b, qi, ki: (b, 0, qi, ki)
        else:
            mask_map = lambda b, qi, ki: (0, 0, qi, ki)
        in_specs.append(pl.BlockSpec((1, H_m, tq, tk), mask_map))
        inputs.append(mask)

    in_specs += [
        pl.BlockSpec((1, tq, D), lambda b, qi, ki, c=cq: (b, qi, c)),   # Q
        pl.BlockSpec((1, tk, D), lambda b, qi, ki, c=ck: (b, ki, c)),   # K
        pl.BlockSpec((1, tk, D), lambda b, qi, ki, c=cv: (b, ki, c)),   # V
    ]
    inputs += [q_arr, k_arr, v_arr]

    kernel = functools.partial(
        _mha_flash_kernel, num_heads=num_heads, has_mask=mask is not None,
        mask_per_head=(mask is not None and mask.shape[1] != 1),
        is_causal=is_causal, tq=tq, tk=tk)

    return pl.pallas_call(
        kernel,
        out_shape=jax.ShapeDtypeStruct((B, S, D), jnp.bfloat16),
        grid=(B, S // tq, S // tk),
        in_specs=in_specs,
        out_specs=pl.BlockSpec((1, tq, D), lambda b, qi, ki: (b, qi, 0)),
        scratch_shapes=[
            pltpu.VMEM((num_heads, tq, 1), jnp.float32),     # running max
            pltpu.VMEM((num_heads, tq, 1), jnp.float32),     # running sum
            pltpu.VMEM((num_heads, tq, d_k), jnp.float32),   # output accumulator
        ],
        compiler_params=pltpu.CompilerParams(
            dimension_semantics=("parallel", "parallel", "arbitrary"),
            vmem_limit_bytes=budget,
        ),
    )(*inputs)


# --------------------------------- forward -----------------------------------

def _prepare_mask(mask, B, S, H):
    m = jnp.asarray(mask)
    if m.dtype == jnp.bool_:
        m = jnp.where(m, 0.0, _NEG_INF).astype(jnp.float32)   # True = attend
    else:
        m = jnp.maximum(m.astype(jnp.float32), _NEG_INF)      # clamp -inf -> finite
    if m.ndim == 2:            # (S, S)
        m = m[None, None]
    elif m.ndim == 3:          # (1|B, S, S)
        m = m[:, None]
    elif m.ndim != 4:          # (1|B, 1|H, S, S)
        raise ValueError(f"unsupported mask rank {m.ndim}")
    if (m.shape[0] not in (1, B) or m.shape[1] not in (1, H)
            or m.shape[2:] != (S, S)):
        raise ValueError(f"mask shape {m.shape} incompatible with B={B}, H={H}, S={S}")
    return m


def attention_mechanism_forward(params, query, key, value, mask=None,
                                is_causal=False, is_self_attention=None):
    """Forward pass of AttentionMechanism (Q/K/V linears + MHA + output linear)."""
    B, S, D = query.shape
    H = params["num_heads"]
    M = B * S

    if is_self_attention is None:
        # TODO(synk): object-identity heuristic misses self-attention under jit
        # tracing; pass is_self_attention=True explicitly in that case.
        is_self_attention = (query is key) and (key is value)

    add_mask = _prepare_mask(mask, B, S, H) if mask is not None else None

    if is_self_attention:
        # Fused QKV projection: one (D, 3D) matmul, activation read from HBM once.
        qkv = pallas_linear(query.reshape(M, D), params["w_qkv"], params["b_qkv"],
                            out_dtype=jnp.bfloat16).reshape(B, S, 3 * D)
        if D % 128 == 0:
            # Attention reads Q/K/V column blocks of the fused array directly.
            ctx = pallas_mha(qkv, qkv, qkv, num_heads=H, model_dim=D,
                             mask=add_mask, is_causal=is_causal,
                             col_blocks=(0, 1, 2))
        else:
            # TODO(synk): model dims not multiple of 128 can't use column-block
            # BlockSpec indexing; fall back to XLA slices.
            q_p, k_p, v_p = qkv[..., :D], qkv[..., D:2 * D], qkv[..., 2 * D:]
            ctx = pallas_mha(q_p, k_p, v_p, num_heads=H, model_dim=D,
                             mask=add_mask, is_causal=is_causal)
    else:
        q_p = pallas_linear(query.reshape(M, D), params["wq"], params["bq"],
                            out_dtype=jnp.bfloat16).reshape(B, S, D)
        k_p = pallas_linear(key.reshape(M, D), params["wk"], params["bk"],
                            out_dtype=jnp.bfloat16).reshape(B, S, D)
        v_p = pallas_linear(value.reshape(M, D), params["wv"], params["bv"],
                            out_dtype=jnp.bfloat16).reshape(B, S, D)
        ctx = pallas_mha(q_p, k_p, v_p, num_heads=H, model_dim=D,
                         mask=add_mask, is_causal=is_causal)

    out = pallas_linear(ctx.reshape(M, D), params["wo"], params["bo"],
                        out_dtype=jnp.float32)
    return out.reshape(B, S, D)


# ----------------------------- params handling -------------------------------

def init_params(key, model_dim, num_heads):
    assert model_dim % num_heads == 0
    ks = jax.random.split(key, 8)
    scale = 1.0 / jnp.sqrt(jnp.float32(model_dim))
    p = {"num_heads": num_heads}
    for i, name in enumerate(["query", "key", "value", "output"]):
        p[name + "_w"] = (
            jax.random.normal(ks[2 * i], (model_dim, model_dim), jnp.float32) * scale)
        p[name + "_b"] = (
            jax.random.normal(ks[2 * i + 1], (model_dim,), jnp.float32) * 0.01)
    return p


def prepare_params(raw):
    """One-time prep (hoisted out of the per-call path): fold 1/sqrt(d_k) into
    W_q/b_q, cast weights to bf16, pre-concatenate the fused QKV weights."""
    H = raw["num_heads"]
    D = raw["query_w"].shape[0]
    d_k = D // H
    scale = 1.0 / math.sqrt(d_k)
    wq = (raw["query_w"] * scale).astype(jnp.bfloat16)
    bq = (raw["query_b"] * scale).astype(jnp.float32)
    wk = raw["key_w"].astype(jnp.bfloat16)
    wv = raw["value_w"].astype(jnp.bfloat16)
    return {
        "num_heads": H,
        "wq": wq, "bq": bq,
        "wk": wk, "bk": raw["key_b"].astype(jnp.float32),
        "wv": wv, "bv": raw["value_b"].astype(jnp.float32),
        "wo": raw["output_w"].astype(jnp.bfloat16),
        "bo": raw["output_b"].astype(jnp.float32),
        "w_qkv": jnp.concatenate([wq, wk, wv], axis=1),
        "b_qkv": jnp.concatenate(
            [bq, raw["key_b"], raw["value_b"]], axis=0).astype(jnp.float32),
    }


# ----------------------------- pure-JAX reference ----------------------------

def _reference_forward(raw, query, key, value, mask=None, is_causal=False):
    H = raw["num_heads"]
    B, S, D = query.shape
    d_k = D // H

    def lin(x, w, b):
        return x @ w + b

    def split(x):
        return x.reshape(B, S, H, d_k).transpose(0, 2, 1, 3)

    qh = split(lin(query, raw["query_w"], raw["query_b"]))
    kh = split(lin(key, raw["key_w"], raw["key_b"]))
    vh = split(lin(value, raw["value_w"], raw["value_b"]))
    s = jnp.einsum("bhqd,bhkd->bhqk", qh, kh) / math.sqrt(d_k)
    if is_causal:
        cm = jnp.tril(jnp.ones((S, S), dtype=bool))
        s = jnp.where(cm[None, None], s, _NEG_INF)
    if mask is not None:
        m = jnp.asarray(mask)
        if m.dtype == jnp.bool_:
            while m.ndim < 4:
                m = m[None]
            s = jnp.where(m, s, _NEG_INF)
        else:
            s = s + m
    p = jax.nn.softmax(s, axis=-1)
    ctx = jnp.einsum("bhqk,bhkd->bhqd", p, vh).transpose(0, 2, 1, 3).reshape(B, S, D)
    return lin(ctx, raw["output_w"], raw["output_b"])


# ----------------------------------- main -------------------------------------

if __name__ == "__main__":
    B, S, D, H = 2, 8, 128, 4
    root = jax.random.PRNGKey(0)
    kp, kx, ky = jax.random.split(root, 3)

    raw = init_params(kp, D, H)
    params = prepare_params(raw)

    x = jax.random.normal(kx, (B, S, D), jnp.float32)
    kv = jax.random.normal(ky, (B, S, D), jnp.float32)

    def check(out, ref):
        assert out.shape == ref.shape
        assert bool(jnp.isfinite(out).all())
        err = float(jnp.max(jnp.abs(out - ref)) / (jnp.max(jnp.abs(ref)) + 1e-6))
        assert err < 0.1, f"relative error too large: {err}"

    # 1) Self-attention, fused QKV projection, no mask.
    out1 = attention_mechanism_forward(params, x, x, x)
    jax.block_until_ready(out1)
    check(out1, _reference_forward(raw, x, x, x))

    # 2) Self-attention with in-kernel causal masking + block skipping.
    out2 = attention_mechanism_forward(params, x, x, x, is_causal=True)
    jax.block_until_ready(out2)
    check(out2, _reference_forward(raw, x, x, x, is_causal=True))

    # 3) Cross-attention path with a boolean (S, S) mask (streamed unbroadcast).
    bool_mask = jnp.tril(jnp.ones((S, S), dtype=bool))
    out3 = attention_mechanism_forward(params, x, kv, kv, mask=bool_mask)
    jax.block_until_ready(out3)
    check(out3, _reference_forward(raw, x, kv, kv, mask=bool_mask))

    print("KERNEL_OK")
</pallas_src>

<mosaic_0001>
module attributes {stable_mosaic.version = 11 : i64} {
  func.func @_linear_kernel(%arg0: i32, %arg1: i32, %arg2: i32, %arg3: memref<16x128xf32, #tpu.memory_space<vmem>>, %arg4: memref<128x384xbf16, #tpu.memory_space<vmem>>, %arg5: memref<1x384xf32, #tpu.memory_space<vmem>>, %arg6: memref<16x384xbf16, #tpu.memory_space<vmem>>, %arg7: memref<16x384xf32, #tpu.memory_space<vmem>>) attributes {dimension_semantics = [#tpu.dimension_semantics<parallel>, #tpu.dimension_semantics<parallel>, #tpu.dimension_semantics<arbitrary>], iteration_bounds = array<i64: 1, 1, 1>, scalar_prefetch = 0 : i64, scratch_operands = 1 : i64, tpu.core_type = #tpu.core_type<tc>, window_params = [{transform_indices = @transform_0, window_bounds = array<i64: 16, 128>}, {transform_indices = @transform_1, window_bounds = array<i64: 128, 384>}, {transform_indices = @transform_2, window_bounds = array<i64: 1, 384>}, {transform_indices = @transform_3, window_bounds = array<i64: 16, 384>}]} {
    %c0_i32 = arith.constant 0 : i32
    %0 = arith.cmpi eq, %arg2, %c0_i32 : i32
    %1 = arith.extui %0 : i1 to i32
    %c0_i32_0 = arith.constant 0 : i32
    %2 = arith.cmpi ne, %1, %c0_i32_0 : i32
    scf.if %2 {
      %cst_10 = arith.constant 0.000000e+00 : f32
      %13 = vector.broadcast %cst_10 : f32 to vector<16x384xf32>
      %c0_11 = arith.constant 0 : index
      %c0_12 = arith.constant 0 : index
      %14 = vector.load %arg7[%c0_11, %c0_12] : memref<16x384xf32, #tpu.memory_space<vmem>>, vector<16x384xf32>
      tpu.vector_store %arg7[%c0_11, %c0_12], %13 {strides = array<i32>} : memref<16x384xf32, #tpu.memory_space<vmem>>, vector<16x384xf32>,
    } else {
    }
    %c0 = arith.constant 0 : index
    %c0_1 = arith.constant 0 : index
    %3 = vector.load %arg7[%c0, %c0_1] : memref<16x384xf32, #tpu.memory_space<vmem>>, vector<16x384xf32>
    %c0_2 = arith.constant 0 : index
    %c0_3 = arith.constant 0 : index
    %4 = vector.load %arg3[%c0_2, %c0_3] : memref<16x128xf32, #tpu.memory_space<vmem>>, vector<16x128xf32>
    %5 = arith.truncf %4 : vector<16x128xf32> to vector<16x128xbf16>
    %c0_4 = arith.constant 0 : index
    %c0_5 = arith.constant 0 : index
    %6 = vector.load %arg4[%c0_4, %c0_5] : memref<128x384xbf16, #tpu.memory_space<vmem>>, vector<128x384xbf16>
    %cst = arith.constant dense<0.000000e+00> : vector<16x384xf32>
    %7 = tpu.matmul %5, %6, %cst {dimension_numbers = #tpu.dot_dimension_numbers<[1], [0], [0], [1], [0, 0, 1, 1], [], []>} : vector<16x128xbf16>, vector<128x384xbf16>, vector<16x384xf32> -> vector<16x384xf32>
    %8 = arith.addf %3, %7 : vector<16x384xf32>
    %c0_6 = arith.constant 0 : index
    %c0_7 = arith.constant 0 : index
    %9 = vector.load %arg7[%c0_6, %c0_7] : memref<16x384xf32, #tpu.memory_space<vmem>>, vector<16x384xf32>
    tpu.vector_store %arg7[%c0_6, %c0_7], %8 {strides = array<i32>} : memref<16x384xf32, #tpu.memory_space<vmem>>, vector<16x384xf32>,
    %c0_i32_8 = arith.constant 0 : i32
    %10 = arith.cmpi eq, %arg2, %c0_i32_8 : i32
    %11 = arith.extui %10 : i1 to i32
    %c0_i32_9 = arith.constant 0 : i32
    %12 = arith.cmpi ne, %11, %c0_i32_9 : i32
    scf.if %12 {
      %c0_10 = arith.constant 0 : index
      %c0_11 = arith.constant 0 : index
      %13 = vector.load %arg7[%c0_10, %c0_11] : memref<16x384xf32, #tpu.memory_space<vmem>>, vector<16x384xf32>
      %c0_12 = arith.constant 0 : index
      %c0_13 = arith.constant 0 : index
      %14 = vector.load %arg5[%c0_12, %c0_13] : memref<1x384xf32, #tpu.memory_space<vmem>>, vector<1x384xf32>
      %15 = vector.broadcast %14 : vector<1x384xf32> to vector<16x384xf32>
      %16 = arith.addf %13, %15 : vector<16x384xf32>
      %17 = arith.truncf %16 : vector<16x384xf32> to vector<16x384xbf16>
      %c0_14 = arith.constant 0 : index
      %c0_15 = arith.constant 0 : index
      %18 = vector.load %arg6[%c0_14, %c0_15] : memref<16x384xbf16, #tpu.memory_space<vmem>>, vector<16x384xbf16>
      tpu.vector_store %arg6[%c0_14, %c0_15], %17 {strides = array<i32>} : memref<16x384xbf16, #tpu.memory_space<vmem>>, vector<16x384xbf16>,
    } else {
    }
    return
  }
  func.func @transform_0(%arg0: i32, %arg1: i32, %arg2: i32) -> (i32, i32) {
    %c0_i32 = arith.constant 0 : i32
    return %arg0, %arg2 : i32, i32
  }
  func.func @transform_1(%arg0: i32, %arg1: i32, %arg2: i32) -> (i32, i32) {
    %c0_i32 = arith.constant 0 : i32
    return %arg2, %arg1 : i32, i32
  }
  func.func @transform_2(%arg0: i32, %arg1: i32, %arg2: i32) -> (i32, i32) {
    %c0_i32 = arith.constant 0 : i32
    %c0_i32_0 = arith.constant 0 : i32
    return %c0_i32, %arg1 : i32, i32
  }
  func.func @transform_3(%arg0: i32, %arg1: i32, %arg2: i32) -> (i32, i32) {
    %c0_i32 = arith.constant 0 : i32
    return %arg0, %arg1 : i32, i32
  }
}

</mosaic_0001>

<bundles_post_ra>
// kernel: tpu_custom_call.1
= control target key start
LH: loop header
LB: loop body
LE: loop exit
PB: predicated region body
PF: predicated region fallthrough
CT: control target
= control target key end

     0   :  { %8 = vsyncpa [#allocation4], 0  ;;  %s643_s0 = inlined_call_operand.hbm [shape: f32[16,128], index: 0, kind: input, shape index: {}]   ;;  %s644_s1 = inlined_call_operand.hbm [shape: bf16[128,384], index: 1, kind: input, shape index: {}]   ;;  %s645_s2 = inlined_call_operand.vmem [shape: f32[1,384], index: 2, kind: input, shape index: {}]   ;;  %s646_s3 = inlined_call_operand.hbm [shape: bf16[16,384], index: 3, kind: output, shape index: {}]  }
   0x1   :  { %9 = vsyncpa [#allocation7], 0 }
   0x2   :  { %10 = vsyncpa [#allocation5], 0  ;;  %s568_s12 = smov [#allocation3]   ;;  %s496_s16 = scalar_lea.hbm %s643_s0, 256 }
   0x3   :  { %s16_s13 = sshll.u32 %s568_s12, 4  ;;  %p497_p0 = scmp.ne.s32.totalorder %s643_s0, %s496_s16  ;;  %s17_s13 = int_to_ptr.vmem [resolvable:$true] %s16_s13 }
   0x4   :  { %p500_p1 = scmp.lt.u32.totalorder %s496_s16, %s643_s0 }
   0x6   :  { %p502_p2 = pnand %p500_p1, %p497_p0 }
   0x8   :  { %505 = shalt.err (!%p502_p2)
}
   0x9   :  { %s506_s21 = scalar_lea.vmem %s17_s13, 256  ;;  %p511_p4 = scmp.lt.s32.totalorder %s17_s13, %s17_s13 }
   0xa   :  { %p507_p3 = scmp.ne.s32.totalorder %s17_s13, %s506_s21  ;;  %p512_p5 = scmp.lt.s32.totalorder %s506_s21, %s506_s21 }
   0xc   :  { %p513_p6 = por %p512_p5, %p511_p4 }
   0xe   :  { %p514_p7 = pnand %p513_p6, %p507_p3 }
  0x10   :  { %517 = shalt.err (!%p514_p7)
}
  0x11   :  { %s569_s22 = smov 128   ;;  %s570_s23 = smov 8  }
  0x12   :  { %22 = dma.hbm_to_vmem [thread:$0]  %s643_s0, 256, %s17_s13, [#allocation4], %s569_s22, %s569_s22, %s570_s23  }
  0x13   :  { %s571_s26 = smov [#allocation6]   ;;  %s518_s30 = scalar_lea.hbm %s644_s1, 3072 }
  0x14   :  { %s28_s27 = sshll.u32 %s571_s26, 4  ;;  %p519_p8 = scmp.ne.s32.totalorder %s644_s1, %s518_s30  ;;  %s29_s27 = int_to_ptr.vmem [resolvable:$true] %s28_s27 }
  0x15   :  { %p522_p9 = scmp.lt.u32.totalorder %s518_s30, %s644_s1 }
  0x17   :  { %p524_p10 = pnand %p522_p9, %p519_p8 }
  0x19   :  { %527 = shalt.err (!%p524_p10)
}
  0x1a   :  { %s528_s8 = scalar_lea.vmem %s29_s27, 3072  ;;  %p533_p12 = scmp.lt.s32.totalorder %s29_s27, %s29_s27 }
  0x1b   :  { %p529_p11 = scmp.ne.s32.totalorder %s29_s27, %s528_s8  ;;  %p534_p13 = scmp.lt.s32.totalorder %s528_s8, %s528_s8 }
  0x1d   :  { %p535_p0 = por %p534_p13, %p533_p12 }
  0x1f   :  { %p536_p1 = pnand %p535_p0, %p529_p11 }
  0x21   :  { %539 = shalt.err (!%p536_p1)
}
  0x22   :  { %s572_s0 = smov 192   ;;  %s573_s9 = smov 12  }
  0x23   :  { %34 = dma.hbm_to_vmem [thread:$0]  %s644_s1, 3072, %s29_s27, [#allocation7], %s572_s0, %s572_s0, %s573_s9  }
  0x24   :  { %562 = dma.done.wait [#allocation4], 256  }
  0x25   :  { %563 = vsyncadd [#allocation4], 4294967040 }
  0x26   :  { %564 = dma.done.wait [#allocation7], 3072  }
  0x27   :  { %565 = vsyncadd [#allocation7], 4294964224  ;;  %v574_v0 = vmov 0.0   ;;  %vm575_vm0 = vmmov 0   ;;  %v576_v1 = vmov 0   ;;  %v60_v25 = vld [vmem:[#allocation3] sm:$0xff]  ;;  %v330_v29 = vlaneseq }
  0x28   :  { %434 = vmatprep.subr.bf16.mxu1 %v574_v0  ;;  %450 = vmatprep.mubr.msk.bf16.mxu1 %vm575_vm0, %v574_v0  ;;  %v464_v2 = vld [vmem:[#allocation6 + $0x4] ss:$12 sps:$4 sm:$0xff]   ;;  %v466_v3 = vld [vmem:[#allocation6 + $0x8] ss:$12 sps:$4 sm:$0xff]   ;;  %v467_v4 = vld [vmem:[#allocation6] ss:$12 sps:$4 sm:$0xff]  }
  0x29   :  { %255 = vmatprep.mubr.bf16.mxu0 %v576_v1  ;;  %223 = vmatprep.subr.bf16.mxu0 %v464_v2  ;;  %v468_v5 = vld [vmem:[#allocation6 + $0x1c] ss:$12 sps:$4 sm:$0xff]   ;;  %v470_v6 = vld [vmem:[#allocation6 + $0x20] ss:$12 sps:$4 sm:$0xff]   ;;  %v471_v7 = vld [vmem:[#allocation6 + $0x18] ss:$12 sps:$4 sm:$0xff]  }
  0x2a   :  { %435 = vmatpush3.bf16.msra.mxu1 %v466_v3  ;;  %224 = vmatpush1.bf16.msra.mxu0 %v467_v4  ;;  %v472_v8 = vld [vmem:[#allocation6 + $0x34] ss:$12 sps:$4 sm:$0xff]   ;;  %v474_v9 = vld [vmem:[#allocation6 + $0x38] ss:$12 sps:$4 sm:$0xff]   ;;  %v475_v10 = vld [vmem:[#allocation6 + $0x30] ss:$12 sps:$4 sm:$0xff]  }
  0x2b   :  { %436 = vmatprep.subr.bf16.mxu1 %v574_v0  ;;  %225 = vmatprep.subr.bf16.mxu0 %v468_v5  ;;  %v476_v11 = vld [vmem:[#allocation6 + $0x4c] ss:$12 sps:$4 sm:$0xff]   ;;  %v478_v12 = vld [vmem:[#allocation6 + $0x50] ss:$12 sps:$4 sm:$0xff]   ;;  %v479_v13 = vld [vmem:[#allocation6 + $0x48] ss:$12 sps:$4 sm:$0xff]  }
  0x2c   :  { %v480_v14 = vld [vmem:[#allocation6 + $0x64] ss:$12 sps:$4 sm:$0xff]   ;;  %v482_v15 = vld [vmem:[#allocation6 + $0x68] ss:$12 sps:$4 sm:$0xff]   ;;  %v483_v16 = vld [vmem:[#allocation6 + $0x60] ss:$12 sps:$4 sm:$0xff]  }
  0x2d   :  { %v484_v17 = vld [vmem:[#allocation6 + $0x7c] ss:$12 sps:$4 sm:$0xff]   ;;  %v486_v18 = vld [vmem:[#allocation6 + $0x80] ss:$12 sps:$4 sm:$0xff]   ;;  %v487_v19 = vld [vmem:[#allocation6 + $0x78] ss:$12 sps:$4 sm:$0xff]  }
  0x2e   :  { %437 = vmatpush3.bf16.msra.mxu1 %v470_v6  ;;  %226 = vmatpush1.bf16.msra.mxu0 %v471_v7  ;;  %v488_v20 = vld [vmem:[#allocation6 + $0x94] ss:$12 sps:$4 sm:$0xff]   ;;  %v490_v21 = vld [vmem:[#allocation6 + $0x98] ss:$12 sps:$4 sm:$0xff]   ;;  %v491_v22 = vld [vmem:[#allocation6 + $0x90] ss:$12 sps:$4 sm:$0xff]  }
  0x2f   :  { %438 = vmatprep.subr.bf16.mxu1 %v574_v0  ;;  %227 = vmatprep.subr.bf16.mxu0 %v472_v8  ;;  %v492_v23 = vld [vmem:[#allocation6 + $0xac] ss:$12 sps:$4 sm:$0xff]   ;;  %v494_v24 = vld [vmem:[#allocation6 + $0xb0] ss:$12 sps:$4 sm:$0xff]   ;;  %v495_v27 = vld [vmem:[#allocation6 + $0xa8] ss:$12 sps:$4 sm:$0xff]  }
  0x30   :  { %v61_v26 = vld [vmem:[#allocation3 + $0x8] sm:$0xff]  ;;  %v331_v30 = vshrl.u32 %v330_v29, 7  ;;  %v328_v32 = vld [vmem:[%s645_s2] sm:$0x7]  ;;  %s577_s2 = smov [#allocation8]  }
  0x31   :  { %v62_v28 = vpack.c.bf16 %v61_v26, %v60_v25  ;;  %s380_s13 = sshll.u32 %s577_s2, 4  ;;  %s381_s13 = int_to_ptr.vmem [resolvable:$true] %s380_s13 }
  0x32   :  { %439 = vmatpush3.bf16.msra.mxu1 %v474_v9  ;;  %228 = vmatpush1.bf16.msra.mxu0 %v475_v10  ;;  %v340_v31 = vsub.s32 2, %v331_v30  ;;  %v332_v33 = vsub.s32 0, %v331_v30  ;;  %v336_v34 = vsub.s32 1, %v331_v30  ;;  %s540_s14 = scalar_lea.vmem %s381_s13, 384  ;;  %p545_p3 = scmp.lt.s32.totalorder %s381_s13, %s381_s13 }
  0x33   :  { %440 = vmatprep.subr.bf16.mxu1 %v574_v0  ;;  %229 = vmatprep.subr.bf16.mxu0 %v476_v11  ;;  %p541_p2 = scmp.ne.s32.totalorder %s381_s13, %s540_s14  ;;  %p546_p4 = scmp.lt.s32.totalorder %s540_s14, %s540_s14 }
  0x34   :  { %v341_v35 = vrot.slane %v328_v32, %v340_v31  ;;  %v333_v36 = vrot.slane %v328_v32, %v332_v33  ;;  %v337_v37 = vrot.slane %v328_v32, %v336_v34 }
  0x35   :  { %p547_p5 = por %p546_p4, %p545_p3 }
  0x36   :  { %441 = vmatpush3.bf16.msra.mxu1 %v478_v12  ;;  %230 = vmatpush1.bf16.msra.mxu0 %v479_v13 }
  0x37   :  { %442 = vmatprep.subr.bf16.mxu1 %v574_v0  ;;  %231 = vmatprep.subr.bf16.mxu0 %v480_v14  ;;  %p548_p6 = pnand %p547_p5, %p541_p2 }
  0x3a   :  { %443 = vmatpush3.bf16.msra.mxu1 %v482_v15  ;;  %232 = vmatpush1.bf16.msra.mxu0 %v483_v16 }
  0x3b   :  { %444 = vmatprep.subr.bf16.mxu1 %v574_v0  ;;  %233 = vmatprep.subr.bf16.mxu0 %v484_v17 }
  0x3e   :  { %445 = vmatpush3.bf16.msra.mxu1 %v486_v18  ;;  %234 = vmatpush1.bf16.msra.mxu0 %v487_v19 }
  0x3f   :  { %446 = vmatprep.subr.bf16.mxu1 %v574_v0  ;;  %235 = vmatprep.subr.bf16.mxu0 %v488_v20 }
  0x42   :  { %447 = vmatpush3.bf16.msra.mxu1 %v490_v21  ;;  %236 = vmatpush1.bf16.msra.mxu0 %v491_v22 }
  0x43   :  { %448 = vmatprep.subr.bf16.mxu1 %v574_v0  ;;  %237 = vmatprep.subr.bf16.mxu0 %v492_v23 }
  0x46   :  { %449 = vmatpush3.bf16.msra.mxu1 %v494_v24  ;;  %238 = vmatpush1.bf16.msra.mxu0 %v495_v27 }
  0x49   :  { %451 = vmatmul.mubr.bf16.vlgmr.msra.gmra.mrb[0].mxu1 %v62_v28  ;;  %256 = vmatmul.mubr.bf16.vlgmr.msra.gmra.mrb[0].mxu0 %v62_v28 }
 0x11c   :  { %v300_v38 = vpop.f32.mrb[0].mxu1  ;;  %v257_v40 = vpop.f32.mrb[0].mxu0 }
 0x11d   :  { %v347_v39 = vadd.f32 %v341_v35, %v300_v38  ;;  %v452_v41 = vpop.f32.mrb[1].mxu1  ;;  %v345_v42 = vadd.f32 %v333_v36, %v257_v40  ;;  %v259_v43 = vpop.f32.mrb[1].mxu0 }
 0x11e   :  { %v303_v44 = vpop.f32.mrb[2].mxu1  ;;  %v346_v46 = vadd.f32 %v337_v37, %v259_v43  ;;  %v261_v48 = vpop.f32.mrb[2].mxu0 }
 0x11f   :  { %v422_v45 = vpack.c.bf16 %v347_v39, %v347_v39  ;;  %v350_v47 = vadd.f32 %v341_v35, %v303_v44  ;;  %v453_v49 = vpop.f32.mrb[3].mxu1  ;;  %v348_v50 = vadd.f32 %v333_v36, %v261_v48  ;;  %v263_v51 = vpop.f32.mrb[3].mxu0 }
 0x120   :  { %v421_v52 = vpack.c.bf16 %v346_v46, %v345_v42  ;;  %v349_v54 = vadd.f32 %v337_v37, %v263_v51 }
 0x121   :  { %372 = vst [vmem:[#allocation8 + $0x8] sm:$0xf] %v422_v45  ;;  %v424_v53 = vpack.c.bf16 %v350_v47, %v350_v47 }
 0x122   :  { %371 = vst [vmem:[#allocation8] sm:$0xff] %v421_v52  ;;  %v423_v55 = vpack.c.bf16 %v349_v54, %v348_v50 }
 0x123   :  { %374 = vst [vmem:[#allocation8 + $0x14] sm:$0xf] %v424_v53 }
 0x124   :  { %373 = vst [vmem:[#allocation8 + $0xc] sm:$0xff] %v423_v55 }
 0x125   :  { %551 = shalt.err (!%p548_p6)
}
 0x126   :  { %s552_s17 = scalar_lea.hbm %s646_s3, 384 }
 0x127   :  { %p553_p7 = scmp.ne.s32.totalorder %s646_s3, %s552_s17  ;;  %p556_p8 = scmp.lt.u32.totalorder %s552_s17, %s646_s3 }
 0x129   :  { %p558_p9 = pnand %p556_p8, %p553_p7 }
 0x12b   :  { %561 = shalt.err (!%p558_p9)
}
 0x12c   :  { %386 = dma.vmem_to_hbm [thread:$0]  %s381_s13, 384, %s646_s3, [#allocation5], %s572_s0, %s572_s0, %s573_s9  }
 0x12d   :  { %566 = dma.done.wait [#allocation5], 384  }
 0x12e   :  { %567 = vsyncadd [#allocation5], 4294966912 }
 0x12f   :  { %390 = vsyncpa [#allocation4], 1 }
 0x130   :  { %391 = vsyncpa [#allocation7], 1 }
 0x131   :  { %392 = vsyncpa [#allocation5], 1 }

</bundles_post_ra>
